<compile_context>
chip_gen: v7x
topology: tpu7x:2x2x1
jax: 0.10.0
libtpu: 0.0.40
codegen_flags: <defaults>
</compile_context>

<pallas_src>
import jax
import jax.numpy as jnp
from jax.experimental import pallas as pl
from jax.experimental.pallas import tpu as pltpu


def _linear_unit_kernel(w_ref, b_ref, x_ref, o_ref):
    # w_ref / b_ref: (1, 1) scalars in SMEM (scalar path); x_ref / o_ref: VMEM tiles.
    w = w_ref[0, 0]
    b = b_ref[0, 0]
    o_ref[...] = (w * x_ref[...].astype(jnp.float32) + b).astype(o_ref.dtype)


def _default_block_rows():
    """4 MiB tiles (1024 rows x 1024 lanes, f32) on v6e/v7x, 2 MiB elsewhere."""
    try:
        kind = jax.devices()[0].device_kind.lower()
    except Exception:
        return 512
    if "v6" in kind or "v7" in kind:
        return 1024
    return 512


def linear_unit_forward(x, w, b, *, block_rows=None, lane_width=1024):
    """Compute w * x + b (elementwise) with a Pallas TPU kernel.

    x : array of any shape (float32 per the module spec; other floats promoted)
    w : array of shape (1,)
    b : array of shape (1,)
    """
    orig_shape = x.shape
    # PyTorch module holds float32 parameters -> result promotes to >= float32.
    out_dtype = jnp.promote_types(x.dtype, jnp.float32)

    w_f = jnp.asarray(w, dtype=jnp.float32).reshape(-1)
    b_f = jnp.asarray(b, dtype=jnp.float32).reshape(-1)

    flat = x.reshape(-1)  # free for contiguous (row-major) inputs
    n = flat.shape[0]
    if n == 0:
        return jnp.zeros(orig_shape, dtype=out_dtype)

    if block_rows is None:
        block_rows = _default_block_rows()

    # Lane-dense slab width: largest multiple of 128 that is <= min(n, lane_width).
    cols = min(lane_width, 128 * (n // 128))
    n_main = (n // cols) * cols if cols > 0 else 0

    parts = []
    if n_main > 0:
        rows = n_main // cols
        x2d = flat[:n_main].reshape(rows, cols)

        itemsize = x2d.dtype.itemsize
        if rows > block_rows:
            tile_rows = block_rows
        elif rows >= 16 and rows * cols * itemsize > (1 << 21):
            # Multi-MiB slab but only one row-block: split into >= 2 grid steps
            # so both v7x TensorCores contribute HBM bandwidth.
            tile_rows = min(rows, (((rows + 1) // 2) + 7) // 8 * 8)
        else:
            tile_rows = rows  # full extent (allowed even if not a multiple of 8)
        grid = (pl.cdiv(rows, tile_rows),)  # ragged row tail -> masked last block

        w_s = w_f.reshape(1, 1)
        b_s = b_f.reshape(1, 1)

        out2d = pl.pallas_call(
            _linear_unit_kernel,
            out_shape=jax.ShapeDtypeStruct((rows, cols), out_dtype),
            grid=grid,
            in_specs=[
                pl.BlockSpec(memory_space=pltpu.SMEM),              # w (1,1) scalar
                pl.BlockSpec(memory_space=pltpu.SMEM),              # b (1,1) scalar
                pl.BlockSpec((tile_rows, cols), lambda i: (i, 0)),  # x tile
            ],
            out_specs=pl.BlockSpec((tile_rows, cols), lambda i: (i, 0)),
            compiler_params=pltpu.CompilerParams(
                dimension_semantics=("parallel",),
            ),
        )(w_s, b_s, x2d)
        parts.append(out2d.reshape(-1))

    if n_main < n:
        # Ragged tail: strictly fewer than `cols` (<= 1023) elements. A plain
        # jnp expression is far cheaper than a whole-array pad + slice.
        tail = flat[n_main:].astype(jnp.float32)
        parts.append((w_f[0] * tail + b_f[0]).astype(out_dtype))

    out = parts[0] if len(parts) == 1 else jnp.concatenate(parts)
    return out.reshape(orig_shape)


if __name__ == "__main__":
    key = jax.random.PRNGKey(0)
    kx, kx2, kw, kb = jax.random.split(key, 4)

    # Deterministic "randn"-style parameters (the module does torch.randn(1)).
    w = jax.random.normal(kw, (1,), dtype=jnp.float32)
    b = jax.random.normal(kb, (1,), dtype=jnp.float32)

    # Small input consistent with the module (elementwise over any shape);
    # e.g. a batch of weather feature rows: batch=2, seq=8, hidden=32.
    x = jax.random.normal(kx, (2, 8, 32), dtype=jnp.float32)
    y = jax.block_until_ready(linear_unit_forward(x, w, b))
    y_ref = w[0] * x + b[0]
    assert y.shape == x.shape and y.dtype == x.dtype
    assert jnp.allclose(y, y_ref, atol=1e-6, rtol=1e-6)

    # Second small check exercising the ragged-tail (kernel prefix + jnp tail) path.
    x2 = jax.random.normal(kx2, (3, 97, 7), dtype=jnp.float32)
    y2 = jax.block_until_ready(linear_unit_forward(x2, w, b))
    y2_ref = w[0] * x2 + b[0]
    assert y2.shape == x2.shape
    assert jnp.allclose(y2, y2_ref, atol=1e-6, rtol=1e-6)

    # TODO(synk): LinearUnit.backward() (manual SGD parameter update) is a
    # training step, not part of the forward pass, and is not implemented here.
    print("KERNEL_OK")
</pallas_src>

<mosaic_0001>
module attributes {stable_mosaic.version = 11 : i64} {
  func.func @_linear_unit_kernel(%arg0: i32, %arg1: memref<1x1xf32, #tpu.memory_space<smem>>, %arg2: memref<1x1xf32, #tpu.memory_space<smem>>, %arg3: memref<1x512xf32, #tpu.memory_space<vmem>>, %arg4: memref<1x512xf32, #tpu.memory_space<vmem>>) attributes {dimension_semantics = [#tpu.dimension_semantics<parallel>], iteration_bounds = array<i64: 1>, scalar_prefetch = 0 : i64, scratch_operands = 0 : i64, tpu.core_type = #tpu.core_type<tc>, window_params = [{transform_indices = @transform_0, window_bounds = array<i64: 1, 1>}, {transform_indices = @transform_1, window_bounds = array<i64: 1, 1>}, {transform_indices = @transform_2, window_bounds = array<i64: 1, 512>}, {transform_indices = @transform_3, window_bounds = array<i64: 1, 512>}]} {
    %c0 = arith.constant 0 : index
    %c0_0 = arith.constant 0 : index
    %0 = memref.load %arg1[%c0, %c0_0] : memref<1x1xf32, #tpu.memory_space<smem>>
    %c0_1 = arith.constant 0 : index
    %c0_2 = arith.constant 0 : index
    %1 = memref.load %arg2[%c0_1, %c0_2] : memref<1x1xf32, #tpu.memory_space<smem>>
    %c0_3 = arith.constant 0 : index
    %c0_4 = arith.constant 0 : index
    %2 = vector.load %arg3[%c0_3, %c0_4] : memref<1x512xf32, #tpu.memory_space<vmem>>, vector<1x512xf32>
    %3 = vector.broadcast %0 : f32 to vector<1x512xf32>
    %4 = arith.mulf %3, %2 : vector<1x512xf32>
    %5 = vector.broadcast %1 : f32 to vector<1x512xf32>
    %6 = arith.addf %4, %5 : vector<1x512xf32>
    %c0_5 = arith.constant 0 : index
    %c0_6 = arith.constant 0 : index
    %7 = vector.load %arg4[%c0_5, %c0_6] : memref<1x512xf32, #tpu.memory_space<vmem>>, vector<1x512xf32>
    tpu.vector_store %arg4[%c0_5, %c0_6], %6 {strides = array<i32>} : memref<1x512xf32, #tpu.memory_space<vmem>>, vector<1x512xf32>,
    return
  }
  func.func @transform_0(%arg0: i32) -> (i32, i32) {
    %c0_i32 = arith.constant 0 : i32
    %c0_i32_0 = arith.constant 0 : i32
    %c0_i32_1 = arith.constant 0 : i32
    return %c0_i32, %c0_i32_0 : i32, i32
  }
  func.func @transform_1(%arg0: i32) -> (i32, i32) {
    %c0_i32 = arith.constant 0 : i32
    %c0_i32_0 = arith.constant 0 : i32
    %c0_i32_1 = arith.constant 0 : i32
    return %c0_i32, %c0_i32_0 : i32, i32
  }
  func.func @transform_2(%arg0: i32) -> (i32, i32) {
    %c0_i32 = arith.constant 0 : i32
    %c0_i32_0 = arith.constant 0 : i32
    return %arg0, %c0_i32 : i32, i32
  }
  func.func @transform_3(%arg0: i32) -> (i32, i32) {
    %c0_i32 = arith.constant 0 : i32
    %c0_i32_0 = arith.constant 0 : i32
    return %arg0, %c0_i32 : i32, i32
  }
}

</mosaic_0001>

<bundles_post_ra>
// kernel: tpu_custom_call.1
= control target key start
LH: loop header
LB: loop body
LE: loop exit
PB: predicated region body
PF: predicated region fallthrough
CT: control target
= control target key end

     0   :  { %v24_v3 = vlaneseq  ;;  %s110_s0 = inlined_call_operand.<no memory space> [shape: f32[1,1], index: 0, kind: input, shape index: {}]   ;;  %s111_s1 = inlined_call_operand.<no memory space> [shape: f32[1,1], index: 1, kind: input, shape index: {}]   ;;  %s112_s2 = inlined_call_operand.vmem [shape: f32[1,512], index: 2, kind: input, shape index: {}]   ;;  %s113_s3 = inlined_call_operand.hbm [shape: f32[1,512], index: 3, kind: output, shape index: {}]  }
   0x1   :  { %v19_v0 = vld [vmem:[%s112_s2] sm:$0xf]  ;;  %v20_v1 = vstv %s110_s0  ;;  %v22_v2 = vstv %s111_s1 }
   0x2   :  { %10 = vsyncpa [#allocation5], 0  ;;  %v21_v4 = vmul.f32 %v20_v1, %v19_v0  ;;  %s68_s18 = smov [#allocation4]   ;;  %vm26_vm0 = vcmp.lt.s32.totalorder %v24_v3, 512 }
   0x3   :  { %s35_s19 = sshll.u32 %s68_s18, 4  ;;  %s36_s19 = int_to_ptr.vmem [resolvable:$true] %s35_s19 }
   0x4   :  { %v23_v5 = vadd.f32 %v22_v2, %v21_v4  ;;  %s44_s20 = scalar_lea.vmem %s36_s19, 64  ;;  %p49_p1 = scmp.lt.s32.totalorder %s36_s19, %s36_s19 }
   0x5   :  { %p45_p0 = scmp.ne.s32.totalorder %s36_s19, %s44_s20  ;;  %p50_p2 = scmp.lt.s32.totalorder %s44_s20, %s44_s20 }
   0x6   :  { %28 = vst.msk [vmem:[#allocation4] sm:$0xf] %vm26_vm0, %v23_v5 }
   0x7   :  { %p51_p3 = por %p50_p2, %p49_p1 }
   0x9   :  { %p52_p4 = pnand %p51_p3, %p45_p0 }
   0xb   :  { %55 = shalt.err (!%p52_p4)
}
   0xc   :  { %s56_s1 = scalar_lea.hbm %s113_s3, 64 }
   0xd   :  { %p57_p5 = scmp.ne.s32.totalorder %s113_s3, %s56_s1  ;;  %p60_p6 = scmp.lt.u32.totalorder %s56_s1, %s113_s3 }
   0xf   :  { %p62_p7 = pnand %p60_p6, %p57_p5 }
  0x11   :  { %65 = shalt.err (!%p62_p7)
}
  0x12   :  { %38 = dma.vmem_to_hbm [thread:$0]  %s36_s19, 64, %s113_s3, [#allocation5]  }
  0x13   :  { %66 = dma.done.wait [#allocation5], 64  }
  0x14   :  { %67 = vsyncadd [#allocation5], 4294967232 }
  0x15   :  { %42 = vsyncpa [#allocation5], 1 }

</bundles_post_ra>
